<compile_context>
chip_gen: v5e
topology: v5e:2x2
jax: 0.10.0
libtpu: 0.0.40
codegen_flags: <defaults>
</compile_context>

<pallas_src>
import functools

import jax
import jax.numpy as jnp
from jax import lax
from jax.experimental import pallas as pl
from jax.experimental.pallas import tpu as pltpu

LANE = 128           # TPU lane width; batch-tile sizes must be multiples of this
MAX_TILE_B = 8192    # upper bound on rows per grid step (~128 KiB bf16 x / ~1 MiB f32 h)


# ----------------------------- Pallas kernel --------------------------------
def _bnn_forward_kernel(x_ref, w1_ref, b1_ref, w2_ref, b2_ref, o_ref):
    # x_ref : (TILE_B, D_in) bf16      -- batch tile, natural layout (no pre-transpose)
    # w1_ref: (1, H, D_in)  bf16       -- weight sample s
    # b1_ref: (1, H, 1)     f32
    # w2_ref: (1, H, 1)     f32        -- second-layer weight column (out_features == 1)
    # b2_ref: (S,)          f32 SMEM   -- per-sample scalar bias
    # o_ref : (1, 1, TILE_B) f32       -- lane-dense output tile
    s = pl.program_id(1)

    # NT matmul on the MXU: (H, D_in) . (TILE_B, D_in)^T -> (H, TILE_B), f32 accumulation.
    h = lax.dot_general(
        w1_ref[0], x_ref[...],
        dimension_numbers=(((1,), (1,)), ((), ())),
        preferred_element_type=jnp.float32,
    )
    h = jnp.maximum(h + b1_ref[0], 0.0)                    # b1 (H,1) broadcasts over lanes

    # Second layer (out_features == 1): VPU multiply + sublane (XLU) reduction
    # instead of a (TILE_B,H)@(H,1) matmul that would use a single MXU column.
    y = jnp.sum(h * w2_ref[0], axis=0, keepdims=True)      # (1, TILE_B)
    o_ref[0] = (y + b2_ref[s]).astype(o_ref.dtype)         # scalar bias from SMEM


def _choose_batch_tiling(batch):
    """Pad batch to an even number (>=2) of lane-aligned tiles of <= MAX_TILE_B rows."""
    b_lane = pl.cdiv(batch, LANE) * LANE
    n_blocks = max(2, pl.cdiv(b_lane, MAX_TILE_B))
    if n_blocks % 2:                      # even block count -> balanced across v7x's 2 TCs
        n_blocks += 1
    tile_b = pl.cdiv(pl.cdiv(b_lane, n_blocks), LANE) * LANE
    b_pad = tile_b * n_blocks
    return b_pad, tile_b, n_blocks


def bnn_forward_pallas(x, w1s, b1s, w2s, b2s):
    """Fused BNN forward for S stacked weight samples.

    x:   (B, D_in) f32
    w1s: (S, H, D_in)   b1s: (S, H)   w2s: (S, H)   b2s: (S,)
    Returns (S, B) f32.
    """
    B, d_in = x.shape
    S, H, _ = w1s.shape
    b_pad, tile_b, n_blocks = _choose_batch_tiling(B)

    # bf16 cast fused with the batch-axis zero pad; layout stays (B, D_in) -> no transpose pass.
    x_p = jnp.pad(x.astype(jnp.bfloat16), ((0, b_pad - B), (0, 0)))

    w1_bf = w1s.astype(jnp.bfloat16)                        # (S, H, D_in)
    b1_col = b1s.reshape(S, H, 1).astype(jnp.float32)
    w2_col = w2s.reshape(S, H, 1).astype(jnp.float32)
    b2_vec = b2s.reshape(-1).astype(jnp.float32)            # (S,)

    # Advisory cost estimate (x read once thanks to residency across the sample axis).
    flops = S * (2 * b_pad * d_in * H + 3 * b_pad * H)
    bytes_accessed = (2 * b_pad * d_in                      # bf16 x, one pass
                      + S * (2 * H * d_in + 8 * H + 4)      # per-sample weights/biases
                      + 4 * S * b_pad)                      # f32 output

    out = pl.pallas_call(
        _bnn_forward_kernel,
        out_shape=jax.ShapeDtypeStruct((S, 1, b_pad), jnp.float32),
        grid=(n_blocks, S),
        in_specs=[
            # x tile: ignores the sample axis -> stays VMEM-resident while s varies.
            pl.BlockSpec((tile_b, d_in), lambda i, s: (i, 0)),
            pl.BlockSpec((1, H, d_in), lambda i, s: (s, 0, 0)),   # W1[s]
            pl.BlockSpec((1, H, 1), lambda i, s: (s, 0, 0)),      # b1[s] column
            pl.BlockSpec((1, H, 1), lambda i, s: (s, 0, 0)),      # w2[s] column
            pl.BlockSpec(memory_space=pltpu.MemorySpace.SMEM),    # b2 scalars -> SMEM
        ],
        out_specs=pl.BlockSpec((1, 1, tile_b), lambda i, s: (s, 0, i)),
        compiler_params=pltpu.CompilerParams(
            dimension_semantics=("parallel", "parallel"),
        ),
        cost_estimate=pl.CostEstimate(
            flops=flops, transcendentals=0, bytes_accessed=bytes_accessed),
    )(x_p, w1_bf, b1_col, w2_col, b2_vec)

    return out[:, 0, :B]                                    # (S, B), drop lane padding


# --------------------------- Bayesian parameters -----------------------------
def init_bayesian_linear(key, in_features, out_features):
    """Deterministic init of a BayesianLinear layer's variational parameters."""
    k_wmu, k_bmu = jax.random.split(key)
    weight_mu = 0.1 * jax.random.normal(k_wmu, (out_features, in_features), jnp.float32)
    weight_rho = jnp.full((out_features, in_features), -5.0, jnp.float32)
    bias_mu = 0.1 * jax.random.normal(k_bmu, (out_features,), jnp.float32)
    bias_rho = jnp.full((out_features,), -5.0, jnp.float32)
    return dict(weight_mu=weight_mu, weight_rho=weight_rho,
                bias_mu=bias_mu, bias_rho=bias_rho)


def realize_weights(params, sample, key=None):
    """Return (W, b) -- the mean weights or a reparameterized sample."""
    if not sample:
        return params["weight_mu"], params["bias_mu"]
    kw, kb = jax.random.split(key)
    w_sigma = jax.nn.softplus(params["weight_rho"])
    b_sigma = jax.nn.softplus(params["bias_rho"])
    w = params["weight_mu"] + w_sigma * jax.random.normal(kw, params["weight_mu"].shape)
    b = params["bias_mu"] + b_sigma * jax.random.normal(kb, params["bias_mu"].shape)
    return w, b


@functools.partial(jax.jit, static_argnames=("sample",))
def bayesian_network_forward(params_l1, params_l2, x, sample=False, key=None):
    """Single forward pass (mean weights or one reparameterized sample). Returns (B, 1)."""
    d_in = params_l1["weight_mu"].shape[1]
    x = x.reshape(-1, d_in).astype(jnp.float32)             # x.view(-1, X.shape[1])
    if sample:
        k1, k2 = jax.random.split(key)
    else:
        k1 = k2 = None
    w1, b1 = realize_weights(params_l1, sample, k1)          # (H, D_in), (H,)
    w2, b2 = realize_weights(params_l2, sample, k2)          # (1, H), (1,)
    y = bnn_forward_pallas(x, w1[None], b1[None], w2.reshape(1, -1), b2.reshape(1))
    return y[0].reshape(-1, 1)


@functools.partial(jax.jit, static_argnames=("num_samples",))
def bayesian_network_forward_mc(params_l1, params_l2, x, key, num_samples):
    """S Monte-Carlo weight samples through ONE gridded pallas_call. Returns (S, B, 1)."""
    d_in = params_l1["weight_mu"].shape[1]
    x = x.reshape(-1, d_in).astype(jnp.float32)
    keys = jax.random.split(key, num_samples)

    def realize_one(k):
        k1, k2 = jax.random.split(k)
        w1, b1 = realize_weights(params_l1, True, k1)
        w2, b2 = realize_weights(params_l2, True, k2)
        return w1, b1, w2.reshape(-1), b2.reshape(())

    w1s, b1s, w2s, b2s = jax.vmap(realize_one)(keys)         # (S,H,D),(S,H),(S,H),(S,)
    y = bnn_forward_pallas(x, w1s, b1s, w2s, b2s)            # (S, B)
    return y[..., None]


if __name__ == "__main__":
    # Abalone: 8 input features; config['hidden_dim'] -> 32; small batch for the demo.
    D_IN, HIDDEN, BATCH = 8, 32, 16

    root = jax.random.PRNGKey(0)
    k_x, k_l1, k_l2, k_sample, k_mc = jax.random.split(root, 5)

    x = jax.random.normal(k_x, (BATCH, D_IN), jnp.float32)
    params_l1 = init_bayesian_linear(k_l1, D_IN, HIDDEN)
    params_l2 = init_bayesian_linear(k_l2, HIDDEN, 1)

    # --- sample=False path (mean weights), numeric check vs plain JAX ---
    y = jax.block_until_ready(
        bayesian_network_forward(params_l1, params_l2, x, sample=False))
    h_ref = jnp.maximum(x @ params_l1["weight_mu"].T + params_l1["bias_mu"], 0.0)
    y_ref = h_ref @ params_l2["weight_mu"].T + params_l2["bias_mu"]
    assert y.shape == (BATCH, 1)
    assert jnp.allclose(y, y_ref, atol=2e-2, rtol=2e-2), float(jnp.max(jnp.abs(y - y_ref)))

    # --- sample=True path (reparameterized weights), numeric check ---
    y_s = jax.block_until_ready(
        bayesian_network_forward(params_l1, params_l2, x, sample=True, key=k_sample))
    k1, k2 = jax.random.split(k_sample)
    w1_s, b1_s = realize_weights(params_l1, True, k1)
    w2_s, b2_s = realize_weights(params_l2, True, k2)
    y_s_ref = jnp.maximum(x @ w1_s.T + b1_s, 0.0) @ w2_s.T + b2_s
    assert y_s.shape == (BATCH, 1)
    assert jnp.allclose(y_s, y_s_ref, atol=2e-2, rtol=2e-2)

    # --- Monte-Carlo: S weight samples batched in one pallas_call ---
    S = 4
    y_mc = jax.block_until_ready(
        bayesian_network_forward_mc(params_l1, params_l2, x, k_mc, num_samples=S))
    assert y_mc.shape == (S, BATCH, 1)
    mc_keys = jax.random.split(k_mc, S)
    for i in range(S):
        ki1, ki2 = jax.random.split(mc_keys[i])
        w1_i, b1_i = realize_weights(params_l1, True, ki1)
        w2_i, b2_i = realize_weights(params_l2, True, ki2)
        y_i_ref = jnp.maximum(x @ w1_i.T + b1_i, 0.0) @ w2_i.T + b2_i
        assert jnp.allclose(y_mc[i], y_i_ref, atol=2e-2, rtol=2e-2)

    print("KERNEL_OK")
</pallas_src>

<mosaic_0001>
module attributes {stable_mosaic.version = 11 : i64} {
  func.func @_bnn_forward_kernel(%arg0: i32, %arg1: i32, %arg2: memref<128x8xbf16, #tpu.memory_space<vmem>>, %arg3: memref<1x32x8xbf16, #tpu.memory_space<vmem>>, %arg4: memref<1x32x1xf32, #tpu.memory_space<vmem>>, %arg5: memref<1x32x1xf32, #tpu.memory_space<vmem>>, %arg6: memref<1xf32, #tpu.memory_space<smem>>, %arg7: memref<1x1x128xf32, #tpu.memory_space<vmem>>) attributes {dimension_semantics = [#tpu.dimension_semantics<parallel>, #tpu.dimension_semantics<parallel>], iteration_bounds = array<i64: 2, 1>, scalar_prefetch = 0 : i64, scratch_operands = 0 : i64, tpu.core_type = #tpu.core_type<tc>, window_params = [{transform_indices = @transform_0, window_bounds = array<i64: 128, 8>}, {transform_indices = @transform_1, window_bounds = array<i64: 1, 32, 8>}, {transform_indices = @transform_2, window_bounds = array<i64: 1, 32, 1>}, {transform_indices = @transform_3, window_bounds = array<i64: 1, 32, 1>}, {transform_indices = @transform_4, window_bounds = array<i64: 1>}, {transform_indices = @transform_5, window_bounds = array<i64: 1, 1, 128>}]} {
    %c0 = arith.constant 0 : index
    %c0_0 = arith.constant 0 : index
    %c0_1 = arith.constant 0 : index
    %0 = vector.load %arg3[%c0, %c0_0, %c0_1] : memref<1x32x8xbf16, #tpu.memory_space<vmem>>, vector<1x32x8xbf16>
    %1 = vector.shape_cast %0 : vector<1x32x8xbf16> to vector<32x8xbf16>
    %c0_2 = arith.constant 0 : index
    %c0_3 = arith.constant 0 : index
    %2 = vector.load %arg2[%c0_2, %c0_3] : memref<128x8xbf16, #tpu.memory_space<vmem>>, vector<128x8xbf16>
    %cst = arith.constant dense<0.000000e+00> : vector<32x128xf32>
    %3 = tpu.matmul %1, %2, %cst {dimension_numbers = #tpu.dot_dimension_numbers<[1], [1], [0], [0], [0, 0, 1, 0], [], []>} : vector<32x8xbf16>, vector<128x8xbf16>, vector<32x128xf32> -> vector<32x128xf32>
    %c0_4 = arith.constant 0 : index
    %c0_5 = arith.constant 0 : index
    %c0_6 = arith.constant 0 : index
    %4 = vector.load %arg4[%c0_4, %c0_5, %c0_6] : memref<1x32x1xf32, #tpu.memory_space<vmem>>, vector<1x32x1xf32>
    %5 = vector.shape_cast %4 : vector<1x32x1xf32> to vector<32x1xf32>
    %6 = vector.broadcast %5 : vector<32x1xf32> to vector<32x128xf32>
    %7 = arith.addf %3, %6 : vector<32x128xf32>
    %cst_7 = arith.constant 0.000000e+00 : f32
    %8 = vector.broadcast %cst_7 : f32 to vector<32x128xf32>
    %9 = arith.maximumf %7, %8 : vector<32x128xf32>
    %c0_8 = arith.constant 0 : index
    %c0_9 = arith.constant 0 : index
    %c0_10 = arith.constant 0 : index
    %10 = vector.load %arg5[%c0_8, %c0_9, %c0_10] : memref<1x32x1xf32, #tpu.memory_space<vmem>>, vector<1x32x1xf32>
    %11 = vector.shape_cast %10 : vector<1x32x1xf32> to vector<32x1xf32>
    %12 = vector.broadcast %11 : vector<32x1xf32> to vector<32x128xf32>
    %13 = arith.mulf %9, %12 : vector<32x128xf32>
    %cst_11 = arith.constant dense<0.000000e+00> : vector<128xf32>
    %14 = vector.multi_reduction <add>, %13, %cst_11 [0] : vector<32x128xf32> to vector<128xf32>
    %15 = vector.shape_cast %14 : vector<128xf32> to vector<1x128xf32>
    %16 = arith.index_cast %arg1 : i32 to index
    %17 = memref.load %arg6[%16] : memref<1xf32, #tpu.memory_space<smem>>
    %18 = vector.broadcast %17 : f32 to vector<1x128xf32>
    %19 = arith.addf %15, %18 : vector<1x128xf32>
    %c0_12 = arith.constant 0 : index
    %c0_13 = arith.constant 0 : index
    %c0_14 = arith.constant 0 : index
    %20 = vector.load %arg7[%c0_12, %c0_13, %c0_14] : memref<1x1x128xf32, #tpu.memory_space<vmem>>, vector<1x1x128xf32>
    %21 = vector.shape_cast %20 : vector<1x1x128xf32> to vector<1x128xf32>
    %22 = vector.shape_cast %19 : vector<1x128xf32> to vector<1x1x128xf32>
    tpu.vector_store %arg7[%c0_12, %c0_13, %c0_14], %22 {strides = array<i32>} : memref<1x1x128xf32, #tpu.memory_space<vmem>>, vector<1x1x128xf32>,
    return
  }
  func.func @transform_0(%arg0: i32, %arg1: i32) -> (i32, i32) {
    %c0_i32 = arith.constant 0 : i32
    %c0_i32_0 = arith.constant 0 : i32
    return %arg0, %c0_i32 : i32, i32
  }
  func.func @transform_1(%arg0: i32, %arg1: i32) -> (i32, i32, i32) {
    %c0_i32 = arith.constant 0 : i32
    %c0_i32_0 = arith.constant 0 : i32
    %c0_i32_1 = arith.constant 0 : i32
    return %arg1, %c0_i32, %c0_i32_0 : i32, i32, i32
  }
  func.func @transform_2(%arg0: i32, %arg1: i32) -> (i32, i32, i32) {
    %c0_i32 = arith.constant 0 : i32
    %c0_i32_0 = arith.constant 0 : i32
    %c0_i32_1 = arith.constant 0 : i32
    return %arg1, %c0_i32, %c0_i32_0 : i32, i32, i32
  }
  func.func @transform_3(%arg0: i32, %arg1: i32) -> (i32, i32, i32) {
    %c0_i32 = arith.constant 0 : i32
    %c0_i32_0 = arith.constant 0 : i32
    %c0_i32_1 = arith.constant 0 : i32
    return %arg1, %c0_i32, %c0_i32_0 : i32, i32, i32
  }
  func.func @transform_4(%arg0: i32, %arg1: i32) -> i32 {
    %c0_i32 = arith.constant 0 : i32
    %c0_i32_0 = arith.constant 0 : i32
    return %c0_i32 : i32
  }
  func.func @transform_5(%arg0: i32, %arg1: i32) -> (i32, i32, i32) {
    %c0_i32 = arith.constant 0 : i32
    %c0_i32_0 = arith.constant 0 : i32
    return %arg1, %c0_i32, %arg0 : i32, i32, i32
  }
}

</mosaic_0001>

<bundles_post_ra>
// kernel: bayesian_network_forward.1
= control target key start
LH: loop header
LB: loop body
LE: loop exit
PB: predicated region body
PF: predicated region fallthrough
CT: control target
= control target key end

     0   :  { %s770_s20 = smov 0   ;;  %s772_s21 = smov 0   ;;  %s858_s0 = inlined_call_operand.vmem [shape: bf16[256,8], index: 0, kind: input, shape index: {}]   ;;  %s859_s1 = inlined_call_operand.vmem [shape: bf16[1,32,8], index: 1, kind: input, shape index: {}]   ;;  %s860_s2 = inlined_call_operand.vmem [shape: f32[1,32,1], index: 2, kind: input, shape index: {}]   ;;  %s861_s3 = inlined_call_operand.vmem [shape: f32[1,32,1], index: 3, kind: input, shape index: {}]   ;;  %s862_s4 = inlined_call_operand.<no memory space> [shape: f32[1], index: 4, kind: input, shape index: {}]   ;;  %s863_s5 = inlined_call_operand.vmem [shape: f32[1,1,256], index: 5, kind: output, shape index: {}]  }
   0x1   :  { %10 = sst [smem:[#allocation2]] %s862_s4  ;;  %s774_s22 = smov 0  }
   0x2 LB: > { %s28_s4 = sadd.s32 1, %s730_s21  ;;  %p619_p0 = scmp.ge.s32.totalorder %s734_s22, 1  ;;  %s734_s22 = sphi %s774_s22, %s16_s22   ;;  %s730_s21 = sphi %s772_s21, %s865_s21   ;;  %s726_s20 = sphi %s770_s20, %s864_s20  }
   0x3   : > { %p30_p1 = scmp.ge.s32.totalorder %s28_s4, 2  ;;  %p233_p2 = scmp.lt.s32.totalorder %s734_s22, 3 }
   0x5   : > { %s867_s4 = smov (%p30_p1, %s28_s4), 0  ;;  %p234_p3 = pnand %p619_p0, %p233_p2 }
   0x6   : > { %s620_s23 = sshll.u32 (!%p234_p3), %s726_s20, 4  ;;  %s491_s26 = sld [smem:[#allocation2]] (!%p234_p3) }
   0x7   : > { %237 = sbr.rel (%p234_p3) target bundleno = 241 (0xf1), region = 40  ;;  %p279_p4 = scmp.lt.s32.totalorder (!%p234_p3), %s620_s23, 31 }
   0x8   : > { %p301_p5 = scmp.lt.s32.totalorder (!%p234_p3), %s726_s20, 1 }
   0xc   : > { %s869_s23 = smov (!%p279_p4, %s620_s23), 31  ;;  %vm400_vm0 = vcmask 64512   ;;  %v326_v6 = vld [vmem:[%s860_s2] sm:$0xff]  ;;  %v736_v8 = vmov 0   ;;  %v328_v10 = vld [vmem:[%s860_s2 + $0x10] sm:$0xff]  ;;  %v327_v13 = vld [vmem:[%s860_s2 + $0x8] sm:$0xff]  ;;  %v492_v59 = vstv %s491_s26 }
   0xd   : > { %s621_s24 = sshll.u32 %s869_s23, 2  ;;  %709 = vset.pattern.permute.xlu0 %v736_v8  ;;  %710 = vset.pattern.permute.xlu1 %v736_v8  ;;  %v329_v14 = vld [vmem:[%s860_s2 + $0x18] sm:$0xff]  ;;  %v454_v15 = vld [vmem:[%s861_s3] sm:$0xff]  ;;  %v456_v18 = vld [vmem:[%s861_s3 + $0x10] sm:$0xff]  ;;  %s871_s20 = smov (!%p301_p5, %s726_s20), 1 }
   0xe   : > { %s794_s27 = scalar_lea.vmem %s858_s0, %s621_s24  ;;  %332 = vperm.xlu0 %709, %v326_v6   ;;  %711 = vset.pattern.permute.xlu2 %v736_v8  ;;  %v457_v19 = vld [vmem:[%s861_s3 + $0x18] sm:$0xff]  ;;  %v455_v20 = vld [vmem:[%s861_s3 + $0x8] sm:$0xff]  ;;  %v666_v25 = vld [vmem:[%s859_s1] sm:$0xff]  ;;  %s305_s29 = scalar_lea.vmem %s863_s5, %s871_s20 }
   0xf   : > { %v675_v0 = vld [vmem:[%s794_s27 + $0x38] sm:$0xff]  ;;  %v674_v2 = vld [vmem:[%s794_s27 + $0x30] sm:$0xff]  ;;  %v673_v4 = vld [vmem:[%s794_s27 + $0x28] sm:$0xff]  ;;  %342 = vperm.xlu1 %710, %v328_v10   ;;  %460 = vperm.xlu2 %711, %v454_v15  }
  0x10   : > { %v429_v1 = vsel %vm400_vm0, %v675_v0, 0  ;;  %v426_v3 = vsel %vm400_vm0, %v674_v2, 0  ;;  %v423_v5 = vsel %vm400_vm0, %v673_v4, 0  ;;  %v672_v7 = vld [vmem:[%s794_s27 + $0x20] sm:$0xff]  ;;  %v671_v11 = vld [vmem:[%s794_s27 + $0x18] sm:$0xff]  ;;  %v670_v16 = vld [vmem:[%s794_s27 + $0x10] sm:$0xff] }
  0x11   : > { %431 = vmatpush.bf16.xpose.msra.mxu0 %v429_v1  ;;  %676 = vmatpush.bf16.xpose.msra.mxu1 %v429_v1  ;;  %v420_v9 = vsel %vm400_vm0, %v672_v7, 0  ;;  %v417_v12 = vsel %vm400_vm0, %v671_v11, 0  ;;  %v414_v17 = vsel %vm400_vm0, %v670_v16, 0  ;;  %v669_v21 = vld [vmem:[%s794_s27 + $0x8] sm:$0xff]  ;;  %v668_v23 = vld [vmem:[%s794_s27] sm:$0xff] }
  0x12   : > { %v411_v22 = vsel %vm400_vm0, %v669_v21, 0  ;;  %v408_v24 = vsel %vm400_vm0, %v668_v23, 0  ;;  %v667_v26 = vld [vmem:[%s859_s1 + $0x8] sm:$0xff] }
  0x16   : > { %337 = vperm.xlu0 %709, %v327_v13  }
  0x17   : > { %347 = vperm.xlu1 %710, %v329_v14   ;;  %465 = vperm.xlu2 %711, %v455_v20  }
  0x19   : > { %432 = vmatpush.bf16.xpose.msra.mxu0 %v426_v3  ;;  %677 = vmatpush.bf16.xpose.msra.mxu1 %v426_v3 }
  0x1e   : > { %470 = vperm.xlu0 %709, %v456_v18  }
  0x1f   : > { %475 = vperm.xlu1 %710, %v457_v19  }
  0x21   : > { %433 = vmatpush.bf16.xpose.msra.mxu0 %v423_v5  ;;  %678 = vmatpush.bf16.xpose.msra.mxu1 %v423_v5 }
  0x29   : > { %434 = vmatpush.bf16.xpose.msra.mxu0 %v420_v9  ;;  %679 = vmatpush.bf16.xpose.msra.mxu1 %v420_v9 }
  0x31   : > { %435 = vmatpush.bf16.xpose.msra.mxu0 %v417_v12  ;;  %680 = vmatpush.bf16.xpose.msra.mxu1 %v417_v12 }
  0x39   : > { %436 = vmatpush.bf16.xpose.msra.mxu0 %v414_v17  ;;  %681 = vmatpush.bf16.xpose.msra.mxu1 %v414_v17 }
  0x41   : > { %437 = vmatpush.bf16.xpose.msra.mxu0 %v411_v22  ;;  %682 = vmatpush.bf16.xpose.msra.mxu1 %v411_v22 }
  0x49   : > { %438 = vmatpush.bf16.xpose.msra.mxu0 %v408_v24  ;;  %683 = vmatpush.bf16.xpose.msra.mxu1 %v408_v24 }
  0x50   : > { %662 = vmatmul.msk.bf16.vlgmr.msra.gmra.mxu0 %vm400_vm0, %v666_v25  ;;  %663 = vmatmul.msk.bf16.vlgmr.msra.gmra.mxu1 %vm400_vm0, %v667_v26 }
  0x69   : > { %v461_v31 = vpop.permute.xlu2 %460 }
  0x71   : > { %v466_v43 = vpop.permute.xlu2 %465 }
  0x80   : > { %v333_v27 = vpop.permute.xlu0 %332 }
  0x81   : > { %v343_v28 = vpop.permute.xlu1 %342 }
  0x88   : > { %v338_v32 = vpop.permute.xlu0 %337 }
  0x89   : > { %v348_v34 = vpop.permute.xlu1 %347 }
  0x90   : > { %v471_v47 = vpop.permute.xlu0 %470 }
  0x91   : > { %v476_v50 = vpop.permute.xlu1 %475 }
  0xcd   : > { %v440_v29 = vpop.f32.mrf.mxu0  ;;  %v445_v30 = vpop.f32.mrf.mxu1 }
  0xce   : > { %v441_v33 = vadd.f32 %v440_v29, %v333_v27  ;;  %v446_v35 = vadd.f32 %v445_v30, %v343_v28 }
  0xd0   : > { %v450_v38 = vmax.f32 %v441_v33, 0.0  ;;  %v452_v41 = vmax.f32 %v446_v35, 0.0 }
  0xd2   : > { %v478_v44 = vmul.f32 %v461_v31, %v450_v38  ;;  %v480_v48 = vmul.f32 %v471_v47, %v452_v41 }
  0xd5   : > { %v442_v36 = vpop.f32.mrf.mxu0  ;;  %v447_v37 = vpop.f32.mrf.mxu1 }
  0xd6   : > { %v443_v39 = vadd.f32 %v442_v36, %v338_v32  ;;  %v448_v40 = vadd.f32 %v447_v37, %v348_v34 }
  0xd8   : > { %v451_v42 = vmax.f32 %v443_v39, 0.0  ;;  %v453_v46 = vmax.f32 %v448_v40, 0.0 }
  0xda   : > { %v479_v45 = vmul.f32 %v466_v43, %v451_v42  ;;  %v481_v51 = vmul.f32 %v476_v50, %v453_v46 }
  0xdc   : > { %v482_v49 = vadd.f32 %v479_v45, %v478_v44 }
  0xde   : > { %v483_v52 = vadd.f32 %v482_v49, %v480_v48 }
  0xe0   : > { %v484_v53 = vadd.f32 %v483_v52, %v481_v51 }
  0xe2   : > { %v485_v54 = vrot.slane %v484_v53, 4 }
  0xe4   : > { %v486_v55 = vadd.f32 %v485_v54, %v484_v53 }
  0xe6   : > { %v487_v56 = vrot.slane %v486_v55, 2 }
  0xe8   : > { %v488_v57 = vadd.f32 %v487_v56, %v486_v55 }
  0xea   : > { %v489_v58 = vrot.slane %v488_v57, 1 }
  0xec   : > { %v490_v60 = vadd.f32 %v489_v58, %v488_v57 }
  0xee   : > { %v493_v61 = vadd.f32 %v492_v59, %v490_v60 }
  0xf0   : > { %494 = vst [vmem:[%s305_s29] sm:$0x1] %v493_v61 }
  0xf1 PF: > { %s16_s22 = sadd.s32 1, %s734_s22   ;;  %s864_s20 = smov %s730_s21 }
  0xf2   : > { %p13_p6 = scmp.ge.s32.totalorder %s16_s22, 4   ;;  %s865_s21 = smov %s867_s4 }
  0xf4   :  { %15 = sbr.rel (!%p13_p6) target bundleno = 2 (0x2), region = 79 }

</bundles_post_ra>
